<compile_context>
chip_gen: v6e
topology: v6e:2x2x1
jax: 0.10.0
libtpu: 0.0.40
codegen_flags: <defaults>
</compile_context>

<pallas_src>
import functools

import jax
import jax.numpy as jnp
from jax.experimental import pallas as pl
from jax.experimental.pallas import tpu as pltpu

LEAKY_SLOPE = 0.01   # PyTorch nn.LeakyReLU default
BN_EPS = 1e-5


def _leaky_relu(x):
    return jnp.where(x >= 0, x, LEAKY_SLOPE * x)


def res_block_kernel(x_ref, w1_ref, t1_ref, wq_ref, t2_ref, w3_ref, t3_ref,
                     o_ref, stk_ref, *, width):
    nb, _, s = x_ref.shape        # nb images per step, S = H*W on the lane axis
    cmid = w1_ref.shape[0]
    w = width

    # Boundary masks, built once per grid step at (1, S) and broadcast in where.
    pcol = jax.lax.broadcasted_iota(jnp.int32, (1, s), 1)   # flattened p = h*W + w
    w_idx = pcol % w
    wrap_r = w_idx == (w - 1)      # last column: right neighbour wraps to col 0
    wrap_l = w_idx == 0            # first column: left neighbour wraps to col W-1
    has_dn = pcol < (s - w)        # row below exists (else zero pad)
    has_up = pcol >= w             # row above exists (else zero pad)

    w1 = w1_ref[...]
    t1 = t1_ref[...]
    wq = wq_ref[...]
    t2 = t2_ref[...]
    w3 = w3_ref[...]
    t3 = t3_ref[...]

    for b in range(nb):            # static, small; amortizes per-step overhead
        x = x_ref[b]                                         # (Cin, S), lane-dense

        # ---- stage 1: 1x1 conv (BN scale folded into w1) + shift + LeakyReLU ----
        h1 = jnp.dot(w1, x, preferred_element_type=jnp.float32)
        h1 = _leaky_relu(h1 + t1)                            # (Cmid, S)

        # ---- stage 2: 3x3 conv, circular pad in W, zero pad in H ----
        # Build only the 3 W-shifted (circular) copies of h1 ...
        left = jnp.where(wrap_l, pltpu.roll(h1, shift=s - w + 1, axis=1),
                         pltpu.roll(h1, shift=1, axis=1))          # h1[c, h, (w-1) mod W]
        right = jnp.where(wrap_r, pltpu.roll(h1, shift=w - 1, axis=1),
                          pltpu.roll(h1, shift=s - 1, axis=1))     # h1[c, h, (w+1) mod W]
        stk_ref[0:cmid, :] = left                                  # kw = 0
        stk_ref[cmid:2 * cmid, :] = h1                             # kw = 1
        stk_ref[2 * cmid:3 * cmid, :] = right                      # kw = 2

        # ... one K=3*Cmid matmul producing the three per-kh partial outputs ...
        q = jnp.dot(wq, stk_ref[...], preferred_element_type=jnp.float32)  # (3*Cmid, S)

        # ... then H-shift (roll) + zero mask + sum the outputs (exact).
        h2 = (jnp.where(has_up,
                        pltpu.roll(q[0:cmid, :], shift=w, axis=1), 0.0)        # kh = 0
              + q[cmid:2 * cmid, :]                                            # kh = 1
              + jnp.where(has_dn,
                          pltpu.roll(q[2 * cmid:3 * cmid, :], shift=s - w, axis=1), 0.0))  # kh = 2
        h2 = _leaky_relu(h2 + t2)                            # (Cmid, S)

        # ---- stage 3: 1x1 conv + BN (no activation) ----
        h3 = jnp.dot(w3, h2, preferred_element_type=jnp.float32) + t3   # (Cout, S)

        # ---- identity residual (in_ch == out_ch) + ReLU ----
        o_ref[b] = jnp.maximum(h3 + x, 0.0)


def res_block(x, params, *, grid_steps=2):
    """x: (N, Cin, H, W) float32, PyTorch-native NCHW layout.

    grid_steps=2 keeps both v7x TensorCores busy (grid sharded "parallel");
    each step processes ceil(N / grid_steps) images, amortizing per-step and
    launch overhead on all generations.
    """
    (w1, s1, t1, w2, s2, t2, w3, s3, t3) = params
    n, cin, h, w = x.shape
    cmid = w1.shape[1]
    cout = w3.shape[1]
    s = h * w

    steps = max(1, min(n, grid_steps))
    nb = -(-n // steps)                      # images per grid step
    n_pad = steps * nb - n

    # Free contiguous reshape: lane axis = flattened spatial H*W.
    xf = x.reshape(n, cin, s)
    if n_pad:
        xf = jnp.concatenate([xf, jnp.zeros((n_pad, cin, s), xf.dtype)], axis=0)

    # Fold BN scales into the conv weights; pre-transpose so the kernel does
    # lane-dense (Cout, S) = W @ (Cin, S) matmuls. Shifts become (C, 1) columns.
    w1t = (w1 * s1[None, :]).T                                    # (Cmid, Cin)
    # 3x3 weights rearranged to (kh*Cout + o, kw*Cin + i): one matmul yields the
    # three per-kh partial outputs, which the kernel H-shifts and sums.
    wq = jnp.transpose(w2 * s2[None, None, None, :],
                       (0, 3, 1, 2)).reshape(3 * cmid, 3 * cmid)  # (3*Cmid, 3*Cmid)
    w3t = (w3 * s3[None, :]).T                                    # (Cout, Cmid)
    t1c = t1.reshape(cmid, 1)
    t2c = t2.reshape(cmid, 1)
    t3c = t3.reshape(cout, 1)

    def fixed(shape):
        return pl.BlockSpec(shape, lambda i, _nd=len(shape): (0,) * _nd)

    out = pl.pallas_call(
        functools.partial(res_block_kernel, width=w),
        out_shape=jax.ShapeDtypeStruct((steps * nb, cout, s), jnp.float32),
        grid_spec=pltpu.PrefetchScalarGridSpec(
            num_scalar_prefetch=0,
            grid=(steps,),
            in_specs=[
                pl.BlockSpec((nb, cin, s), lambda i: (i, 0, 0)),
                fixed(w1t.shape), fixed(t1c.shape),
                fixed(wq.shape), fixed(t2c.shape),
                fixed(w3t.shape), fixed(t3c.shape),
            ],
            out_specs=pl.BlockSpec((nb, cout, s), lambda i: (i, 0, 0)),
            scratch_shapes=[pltpu.VMEM((3 * cmid, s), jnp.float32)],
        ),
        compiler_params=pltpu.CompilerParams(
            dimension_semantics=("parallel",)),
    )(xf, w1t, t1c, wq, t2c, w3t, t3c)

    if n_pad:
        out = out[:n]
    return out.reshape(n, cout, h, w)


def _bn_fold(bias, gamma, beta, mean, var):
    scale = gamma / jnp.sqrt(var + BN_EPS)
    shift = (bias - mean) * scale + beta
    return scale, shift


def _reference(x, params):
    # pure-JAX NCHW reference of the same forward pass
    (w1, s1, t1, w2, s2, t2, w3, s3, t3) = params

    def bn(y, sc, sh):
        return y * sc[None, :, None, None] + sh[None, :, None, None]

    h1 = _leaky_relu(bn(jnp.einsum('nchw,cd->ndhw', x, w1), s1, t1))
    hp = jnp.concatenate([h1[..., -1:], h1, h1[..., :1]], axis=-1)   # circular W
    hp = jnp.pad(hp, ((0, 0), (0, 0), (1, 1), (0, 0)))               # zero H
    h2 = jax.lax.conv_general_dilated(
        hp, w2, (1, 1), 'VALID', dimension_numbers=('NCHW', 'HWIO', 'NCHW'))
    h2 = _leaky_relu(bn(h2, s2, t2))
    h3 = bn(jnp.einsum('nchw,cd->ndhw', h2, w3), s3, t3)
    return jnp.maximum(h3 + x, 0.0)


if __name__ == "__main__":
    # Res_block(in_ch=4, mid_ch=8, out_ch=4, circular_padding=True)
    # -> in_ch == out_ch branch: stride 1 everywhere, identity residual.
    # TODO(synk): the in_ch != out_ch stride-2 / 1x1-conv identity branch is not exercised here.
    N, H, W = 2, 16, 16
    Cin, Cmid, Cout = 4, 8, 4

    keys = jax.random.split(jax.random.PRNGKey(0), 20)

    # conv1: 1x1 Cin->Cmid (+ BN1)
    w1 = 0.2 * jax.random.normal(keys[0], (Cin, Cmid), jnp.float32)
    b1 = 0.1 * jax.random.normal(keys[1], (Cmid,), jnp.float32)
    s1, t1 = _bn_fold(b1,
                      1.0 + 0.1 * jax.random.normal(keys[2], (Cmid,), jnp.float32),
                      0.1 * jax.random.normal(keys[3], (Cmid,), jnp.float32),
                      0.1 * jax.random.normal(keys[4], (Cmid,), jnp.float32),
                      0.5 + 0.1 * jnp.abs(jax.random.normal(keys[5], (Cmid,), jnp.float32)))

    # conv2: 3x3 Cmid->Cmid, circular W pad (+ BN2)
    w2 = 0.1 * jax.random.normal(keys[6], (3, 3, Cmid, Cmid), jnp.float32)
    b2 = 0.1 * jax.random.normal(keys[7], (Cmid,), jnp.float32)
    s2, t2 = _bn_fold(b2,
                      1.0 + 0.1 * jax.random.normal(keys[8], (Cmid,), jnp.float32),
                      0.1 * jax.random.normal(keys[9], (Cmid,), jnp.float32),
                      0.1 * jax.random.normal(keys[10], (Cmid,), jnp.float32),
                      0.5 + 0.1 * jnp.abs(jax.random.normal(keys[11], (Cmid,), jnp.float32)))

    # conv3: 1x1 Cmid->Cout (+ BN3, no activation)
    w3 = 0.2 * jax.random.normal(keys[12], (Cmid, Cout), jnp.float32)
    b3 = 0.1 * jax.random.normal(keys[13], (Cout,), jnp.float32)
    s3, t3 = _bn_fold(b3,
                      1.0 + 0.1 * jax.random.normal(keys[14], (Cout,), jnp.float32),
                      0.1 * jax.random.normal(keys[15], (Cout,), jnp.float32),
                      0.1 * jax.random.normal(keys[16], (Cout,), jnp.float32),
                      0.5 + 0.1 * jnp.abs(jax.random.normal(keys[17], (Cout,), jnp.float32)))

    params = (w1, s1, t1, w2, s2, t2, w3, s3, t3)

    # PyTorch-native NCHW input (2, 4, 16, 16) -- no layout transpose needed.
    x = jax.random.normal(keys[18], (N, Cin, H, W), jnp.float32)

    out = jax.block_until_ready(res_block(x, params))
    ref = jax.block_until_ready(_reference(x, params))
    assert out.shape == (N, Cout, H, W)
    assert jnp.allclose(out, ref, atol=1e-2, rtol=1e-2)
    print("KERNEL_OK")
</pallas_src>

<mosaic_0001>
module attributes {stable_mosaic.version = 11 : i64} {
  func.func @res_block_kernel(%arg0: i32, %arg1: memref<1x4x256xf32, #tpu.memory_space<vmem>>, %arg2: memref<8x4xf32, #tpu.memory_space<vmem>>, %arg3: memref<8x1xf32, #tpu.memory_space<vmem>>, %arg4: memref<24x24xf32, #tpu.memory_space<vmem>>, %arg5: memref<8x1xf32, #tpu.memory_space<vmem>>, %arg6: memref<4x8xf32, #tpu.memory_space<vmem>>, %arg7: memref<4x1xf32, #tpu.memory_space<vmem>>, %arg8: memref<1x4x256xf32, #tpu.memory_space<vmem>>, %arg9: memref<24x256xf32, #tpu.memory_space<vmem>>) attributes {dimension_semantics = [#tpu.dimension_semantics<parallel>], iteration_bounds = array<i64: 2>, scalar_prefetch = 0 : i64, scratch_operands = 1 : i64, tpu.core_type = #tpu.core_type<tc>, window_params = [{transform_indices = @transform_0, window_bounds = array<i64: 1, 4, 256>}, {pipeline_mode = #tpu.pipeline_mode<synchronous>, transform_indices = @transform_1, window_bounds = array<i64: 8, 4>}, {pipeline_mode = #tpu.pipeline_mode<synchronous>, transform_indices = @transform_2, window_bounds = array<i64: 8, 1>}, {pipeline_mode = #tpu.pipeline_mode<synchronous>, transform_indices = @transform_3, window_bounds = array<i64: 24, 24>}, {pipeline_mode = #tpu.pipeline_mode<synchronous>, transform_indices = @transform_4, window_bounds = array<i64: 8, 1>}, {pipeline_mode = #tpu.pipeline_mode<synchronous>, transform_indices = @transform_5, window_bounds = array<i64: 4, 8>}, {pipeline_mode = #tpu.pipeline_mode<synchronous>, transform_indices = @transform_6, window_bounds = array<i64: 4, 1>}, {transform_indices = @transform_7, window_bounds = array<i64: 1, 4, 256>}]} {
    %0 = tpu.iota {dimensions = array<i32: 1>} : vector<1x256xi32>
    %c16_i32 = arith.constant 16 : i32
    %c0_i32 = arith.constant 0 : i32
    %1 = arith.cmpi eq, %c16_i32, %c0_i32 : i32
    %c1_i32 = arith.constant 1 : i32
    %2 = arith.select %1, %c1_i32, %c16_i32 : i32
    %3 = vector.broadcast %2 : i32 to vector<1x256xi32>
    %4 = arith.remsi %0, %3 : vector<1x256xi32>
    %c0_i32_0 = arith.constant 0 : i32
    %5 = vector.broadcast %c0_i32_0 : i32 to vector<1x256xi32>
    %6 = arith.cmpi ne, %4, %5 : vector<1x256xi32>
    %c0_i32_1 = arith.constant 0 : i32
    %7 = vector.broadcast %c0_i32_1 : i32 to vector<1x256xi32>
    %8 = arith.cmpi slt, %4, %7 : vector<1x256xi32>
    %c0_i32_2 = arith.constant 0 : i32
    %9 = arith.cmpi slt, %2, %c0_i32_2 : i32
    %10 = vector.broadcast %9 : i1 to vector<1x256xi1>
    %11 = vector.broadcast %10 : vector<1x256xi1> to vector<1x256xi1>
    %12 = arith.xori %8, %11 : vector<1x256xi1>
    %13 = arith.andi %12, %6 : vector<1x256xi1>
    %14 = vector.broadcast %2 : i32 to vector<1x256xi32>
    %15 = arith.addi %4, %14 : vector<1x256xi32>
    %16 = arith.select %13, %15, %4 : vector<1x256xi1>, vector<1x256xi32>
    %c15_i32 = arith.constant 15 : i32
    %17 = vector.broadcast %c15_i32 : i32 to vector<1x256xi32>
    %18 = arith.cmpi eq, %16, %17 : vector<1x256xi32>
    %c0_i32_3 = arith.constant 0 : i32
    %19 = vector.broadcast %c0_i32_3 : i32 to vector<1x256xi32>
    %20 = arith.cmpi eq, %16, %19 : vector<1x256xi32>
    %c240_i32 = arith.constant 240 : i32
    %21 = vector.broadcast %c240_i32 : i32 to vector<1x256xi32>
    %22 = arith.cmpi slt, %0, %21 : vector<1x256xi32>
    %c16_i32_4 = arith.constant 16 : i32
    %23 = vector.broadcast %c16_i32_4 : i32 to vector<1x256xi32>
    %24 = arith.cmpi sge, %0, %23 : vector<1x256xi32>
    %c0 = arith.constant 0 : index
    %c0_5 = arith.constant 0 : index
    %25 = vector.load %arg2[%c0, %c0_5] : memref<8x4xf32, #tpu.memory_space<vmem>>, vector<8x4xf32>
    %c0_6 = arith.constant 0 : index
    %c0_7 = arith.constant 0 : index
    %26 = vector.load %arg3[%c0_6, %c0_7] : memref<8x1xf32, #tpu.memory_space<vmem>>, vector<8x1xf32>
    %c0_8 = arith.constant 0 : index
    %c0_9 = arith.constant 0 : index
    %27 = vector.load %arg4[%c0_8, %c0_9] : memref<24x24xf32, #tpu.memory_space<vmem>>, vector<24x24xf32>
    %c0_10 = arith.constant 0 : index
    %c0_11 = arith.constant 0 : index
    %28 = vector.load %arg5[%c0_10, %c0_11] : memref<8x1xf32, #tpu.memory_space<vmem>>, vector<8x1xf32>
    %c0_12 = arith.constant 0 : index
    %c0_13 = arith.constant 0 : index
    %29 = vector.load %arg6[%c0_12, %c0_13] : memref<4x8xf32, #tpu.memory_space<vmem>>, vector<4x8xf32>
    %c0_14 = arith.constant 0 : index
    %c0_15 = arith.constant 0 : index
    %30 = vector.load %arg7[%c0_14, %c0_15] : memref<4x1xf32, #tpu.memory_space<vmem>>, vector<4x1xf32>
    %c0_16 = arith.constant 0 : index
    %c0_17 = arith.constant 0 : index
    %c0_18 = arith.constant 0 : index
    %31 = vector.load %arg1[%c0_16, %c0_17, %c0_18] : memref<1x4x256xf32, #tpu.memory_space<vmem>>, vector<1x4x256xf32>
    %32 = vector.shape_cast %31 : vector<1x4x256xf32> to vector<4x256xf32>
    %cst = arith.constant dense<0.000000e+00> : vector<8x256xf32>
    %33 = tpu.matmul %25, %32, %cst {dimension_numbers = #tpu.dot_dimension_numbers<[1], [0], [0], [1], [0, 0, 1, 1], [], []>} : vector<8x4xf32>, vector<4x256xf32>, vector<8x256xf32> -> vector<8x256xf32>
    %34 = vector.broadcast %26 : vector<8x1xf32> to vector<8x256xf32>
    %35 = arith.addf %33, %34 : vector<8x256xf32>
    %cst_19 = arith.constant 0.000000e+00 : f32
    %36 = vector.broadcast %cst_19 : f32 to vector<8x256xf32>
    %37 = arith.cmpf oge, %35, %36 : vector<8x256xf32>
    %cst_20 = arith.constant 0.00999999977 : f32
    %38 = vector.broadcast %cst_20 : f32 to vector<8x256xf32>
    %39 = arith.mulf %38, %35 : vector<8x256xf32>
    %40 = arith.select %37, %35, %39 : vector<8x256xi1>, vector<8x256xf32>
    %c241_i32 = arith.constant 241 : i32
    %41 = tpu.dynamic_rotate %40 by %c241_i32 dim 1 : vector<8x256xf32>, i32 -> vector<8x256xf32>
    %c1_i32_21 = arith.constant 1 : i32
    %42 = tpu.dynamic_rotate %40 by %c1_i32_21 dim 1 : vector<8x256xf32>, i32 -> vector<8x256xf32>
    %43 = vector.shape_cast %20 : vector<1x256xi1> to vector<1x256xi1>
    %44 = vector.broadcast %43 : vector<1x256xi1> to vector<8x256xi1>
    %45 = arith.select %44, %41, %42 : vector<8x256xi1>, vector<8x256xf32>
    %c15_i32_22 = arith.constant 15 : i32
    %46 = tpu.dynamic_rotate %40 by %c15_i32_22 dim 1 : vector<8x256xf32>, i32 -> vector<8x256xf32>
    %c255_i32 = arith.constant 255 : i32
    %47 = tpu.dynamic_rotate %40 by %c255_i32 dim 1 : vector<8x256xf32>, i32 -> vector<8x256xf32>
    %48 = vector.shape_cast %18 : vector<1x256xi1> to vector<1x256xi1>
    %49 = vector.broadcast %48 : vector<1x256xi1> to vector<8x256xi1>
    %50 = arith.select %49, %46, %47 : vector<8x256xi1>, vector<8x256xf32>
    %c0_23 = arith.constant 0 : index
    %c0_24 = arith.constant 0 : index
    %51 = vector.load %arg9[%c0_23, %c0_24] : memref<24x256xf32, #tpu.memory_space<vmem>>, vector<8x256xf32>
    tpu.vector_store %arg9[%c0_23, %c0_24], %45 {strides = array<i32>} : memref<24x256xf32, #tpu.memory_space<vmem>>, vector<8x256xf32>,
    %c8 = arith.constant 8 : index
    %c0_25 = arith.constant 0 : index
    %52 = vector.load %arg9[%c8, %c0_25] : memref<24x256xf32, #tpu.memory_space<vmem>>, vector<8x256xf32>
    tpu.vector_store %arg9[%c8, %c0_25], %40 {strides = array<i32>} : memref<24x256xf32, #tpu.memory_space<vmem>>, vector<8x256xf32>,
    %c16 = arith.constant 16 : index
    %c0_26 = arith.constant 0 : index
    %53 = vector.load %arg9[%c16, %c0_26] : memref<24x256xf32, #tpu.memory_space<vmem>>, vector<8x256xf32>
    tpu.vector_store %arg9[%c16, %c0_26], %50 {strides = array<i32>} : memref<24x256xf32, #tpu.memory_space<vmem>>, vector<8x256xf32>,
    %c0_27 = arith.constant 0 : index
    %c0_28 = arith.constant 0 : index
    %54 = vector.load %arg9[%c0_27, %c0_28] : memref<24x256xf32, #tpu.memory_space<vmem>>, vector<24x256xf32>
    %cst_29 = arith.constant dense<0.000000e+00> : vector<24x256xf32>
    %55 = tpu.matmul %27, %54, %cst_29 {dimension_numbers = #tpu.dot_dimension_numbers<[1], [0], [0], [1], [0, 0, 1, 1], [], []>} : vector<24x24xf32>, vector<24x256xf32>, vector<24x256xf32> -> vector<24x256xf32>
    %56 = vector.extract_strided_slice %55 {offsets = [0, 0], sizes = [8, 256], strides = [1, 1]} : vector<24x256xf32> to vector<8x256xf32>
    %c16_i32_30 = arith.constant 16 : i32
    %57 = tpu.dynamic_rotate %56 by %c16_i32_30 dim 1 : vector<8x256xf32>, i32 -> vector<8x256xf32>
    %cst_31 = arith.constant 0.000000e+00 : f32
    %58 = vector.shape_cast %24 : vector<1x256xi1> to vector<1x256xi1>
    %59 = vector.broadcast %58 : vector<1x256xi1> to vector<8x256xi1>
    %60 = vector.broadcast %cst_31 : f32 to vector<8x256xf32>
    %61 = arith.select %59, %57, %60 : vector<8x256xi1>, vector<8x256xf32>
    %62 = vector.extract_strided_slice %55 {offsets = [8, 0], sizes = [8, 256], strides = [1, 1]} : vector<24x256xf32> to vector<8x256xf32>
    %63 = arith.addf %61, %62 : vector<8x256xf32>
    %64 = vector.extract_strided_slice %55 {offsets = [16, 0], sizes = [8, 256], strides = [1, 1]} : vector<24x256xf32> to vector<8x256xf32>
    %c240_i32_32 = arith.constant 240 : i32
    %65 = tpu.dynamic_rotate %64 by %c240_i32_32 dim 1 : vector<8x256xf32>, i32 -> vector<8x256xf32>
    %cst_33 = arith.constant 0.000000e+00 : f32
    %66 = vector.shape_cast %22 : vector<1x256xi1> to vector<1x256xi1>
    %67 = vector.broadcast %66 : vector<1x256xi1> to vector<8x256xi1>
    %68 = vector.broadcast %cst_33 : f32 to vector<8x256xf32>
    %69 = arith.select %67, %65, %68 : vector<8x256xi1>, vector<8x256xf32>
    %70 = arith.addf %63, %69 : vector<8x256xf32>
    %71 = vector.broadcast %28 : vector<8x1xf32> to vector<8x256xf32>
    %72 = arith.addf %70, %71 : vector<8x256xf32>
    %cst_34 = arith.constant 0.000000e+00 : f32
    %73 = vector.broadcast %cst_34 : f32 to vector<8x256xf32>
    %74 = arith.cmpf oge, %72, %73 : vector<8x256xf32>
    %cst_35 = arith.constant 0.00999999977 : f32
    %75 = vector.broadcast %cst_35 : f32 to vector<8x256xf32>
    %76 = arith.mulf %75, %72 : vector<8x256xf32>
    %77 = arith.select %74, %72, %76 : vector<8x256xi1>, vector<8x256xf32>
    %cst_36 = arith.constant dense<0.000000e+00> : vector<4x256xf32>
    %78 = tpu.matmul %29, %77, %cst_36 {dimension_numbers = #tpu.dot_dimension_numbers<[1], [0], [0], [1], [0, 0, 1, 1], [], []>} : vector<4x8xf32>, vector<8x256xf32>, vector<4x256xf32> -> vector<4x256xf32>
    %79 = vector.broadcast %30 : vector<4x1xf32> to vector<4x256xf32>
    %80 = arith.addf %78, %79 : vector<4x256xf32>
    %81 = arith.addf %80, %32 : vector<4x256xf32>
    %cst_37 = arith.constant 0.000000e+00 : f32
    %82 = vector.broadcast %cst_37 : f32 to vector<4x256xf32>
    %83 = arith.maximumf %81, %82 : vector<4x256xf32>
    %c0_38 = arith.constant 0 : index
    %c0_39 = arith.constant 0 : index
    %c0_40 = arith.constant 0 : index
    %84 = vector.load %arg8[%c0_38, %c0_39, %c0_40] : memref<1x4x256xf32, #tpu.memory_space<vmem>>, vector<1x4x256xf32>
    %85 = vector.shape_cast %84 : vector<1x4x256xf32> to vector<4x256xf32>
    %86 = vector.shape_cast %83 : vector<4x256xf32> to vector<1x4x256xf32>
    tpu.vector_store %arg8[%c0_38, %c0_39, %c0_40], %86 {strides = array<i32>} : memref<1x4x256xf32, #tpu.memory_space<vmem>>, vector<1x4x256xf32>,
    return
  }
  func.func @transform_0(%arg0: i32) -> (i32, i32, i32) {
    %c0_i32 = arith.constant 0 : i32
    %c0_i32_0 = arith.constant 0 : i32
    %c0_i32_1 = arith.constant 0 : i32
    return %arg0, %c0_i32, %c0_i32_0 : i32, i32, i32
  }
  func.func @transform_1(%arg0: i32) -> (i32, i32) {
    %c0_i32 = arith.constant 0 : i32
    %c0_i32_0 = arith.constant 0 : i32
    %c0_i32_1 = arith.constant 0 : i32
    return %c0_i32, %c0_i32_0 : i32, i32
  }
  func.func @transform_2(%arg0: i32) -> (i32, i32) {
    %c0_i32 = arith.constant 0 : i32
    %c0_i32_0 = arith.constant 0 : i32
    %c0_i32_1 = arith.constant 0 : i32
    return %c0_i32, %c0_i32_0 : i32, i32
  }
  func.func @transform_3(%arg0: i32) -> (i32, i32) {
    %c0_i32 = arith.constant 0 : i32
    %c0_i32_0 = arith.constant 0 : i32
    %c0_i32_1 = arith.constant 0 : i32
    return %c0_i32, %c0_i32_0 : i32, i32
  }
  func.func @transform_4(%arg0: i32) -> (i32, i32) {
    %c0_i32 = arith.constant 0 : i32
    %c0_i32_0 = arith.constant 0 : i32
    %c0_i32_1 = arith.constant 0 : i32
    return %c0_i32, %c0_i32_0 : i32, i32
  }
  func.func @transform_5(%arg0: i32) -> (i32, i32) {
    %c0_i32 = arith.constant 0 : i32
    %c0_i32_0 = arith.constant 0 : i32
    %c0_i32_1 = arith.constant 0 : i32
    return %c0_i32, %c0_i32_0 : i32, i32
  }
  func.func @transform_6(%arg0: i32) -> (i32, i32) {
    %c0_i32 = arith.constant 0 : i32
    %c0_i32_0 = arith.constant 0 : i32
    %c0_i32_1 = arith.constant 0 : i32
    return %c0_i32, %c0_i32_0 : i32, i32
  }
  func.func @transform_7(%arg0: i32) -> (i32, i32, i32) {
    %c0_i32 = arith.constant 0 : i32
    %c0_i32_0 = arith.constant 0 : i32
    %c0_i32_1 = arith.constant 0 : i32
    return %arg0, %c0_i32, %c0_i32_0 : i32, i32, i32
  }
}

</mosaic_0001>

<bundles_post_ra>
// kernel: tpu_custom_call.1
= control target key start
LH: loop header
LB: loop body
LE: loop exit
PB: predicated region body
PF: predicated region fallthrough
CT: control target
= control target key end

     0   :  { %12 = vsyncpa [#allocation4], 0  ;;  %s1089_s0 = inlined_call_operand.vmem [shape: f32[2,4,256], index: 0, kind: input, shape index: {}]   ;;  %s1090_s1 = inlined_call_operand.vmem [shape: f32[8,4], index: 1, kind: input, shape index: {}]   ;;  %s1091_s2 = inlined_call_operand.vmem [shape: f32[8,1], index: 2, kind: input, shape index: {}]   ;;  %s1092_s3 = inlined_call_operand.vmem [shape: f32[24,24], index: 3, kind: input, shape index: {}]   ;;  %s1093_s4 = inlined_call_operand.vmem [shape: f32[8,1], index: 4, kind: input, shape index: {}]   ;;  %s1094_s5 = inlined_call_operand.vmem [shape: f32[4,8], index: 5, kind: input, shape index: {}]   ;;  %s1095_s6 = inlined_call_operand.vmem [shape: f32[4,1], index: 6, kind: input, shape index: {}]   ;;  %s1096_s7 = inlined_call_operand.hbm [shape: f32[2,4,256], index: 7, kind: output, shape index: {}]  }
   0x1   :  { %14 = vsyncpa [#allocation4 + $0x1], 0  ;;  %s948_s24 = smov 0   ;;  %s950_s25 = smov 0  }
   0x2   :  { %s952_s26 = smov 0   ;;  %s954_s27 = smov 0  }
   0x3 LB: > { %s969_s28 = sadd.s32 4294967295, %s897_s27   ;;  %s766_s29 = sadd.s32 4294967294, %s897_s27   ;;  %s897_s27 = sphi %s954_s27, %s1102_s27   ;;  %s893_s26 = sphi %s952_s26, %s1101_s26   ;;  %s889_s25 = sphi %s950_s25, %s1100_s25   ;;  %s885_s24 = sphi %s948_s24, %s1099_s24  }
   0x4   : > { %s973_s30 = sadd.s32 1, %s897_s27   ;;  %s179_s8 = sadd.s32 1, %s893_s26 }
   0x5   : > { %s176_s9 = ssub.s32 %s897_s27, %s973_s30  ;;  %p189_p0 = scmp.ne.s32.totalorder %s893_s26, %s889_s25 }
   0x6   : > { %p177_p1 = scmp.eq.s32.totalorder %s176_s9, 0  ;;  %p190_p2 = scmp.eq.s32.totalorder %s969_s28, 1 }
   0x7   : > { %p195_p3 = scmp.ne.s32.totalorder %s889_s25, %s885_s24  ;;  %p196_p4 = scmp.eq.s32.totalorder %s766_s29, 1 }
   0x8   : > { %s984_s10 = scalar_select %p177_p1, %s893_s26, %s179_s8  }
   0x9   : > { %p986_p5 = por %p190_p2, %p189_p0  ;;  %p990_p6 = por %p196_p4, %p195_p3 }
   0xa   : > { %p769_p7 = scmp.ge.s32.totalorder %s897_s27, 1  ;;  %p240_p8 = scmp.lt.s32.totalorder %s897_s27, 3 }
   0xc   : > { %p241_p9 = pnand %p769_p7, %p240_p8 }
   0xd   : > { %p272_p10 = scmp.lt.s32.totalorder (!%p241_p9), %s969_s28, 1  ;;  %s901_s22 = smov (!%p241_p9), 127  }
   0xe   : > { %244 = sbr.rel (%p241_p9) target bundleno = 902 (0x386), region = 48  ;;  %s902_s23 = smov (!%p241_p9), 15  }
   0xf   : > { %s903_s29 = smov (!%p241_p9), 113   ;;  %s904_s8 = smov (!%p241_p9), 1  }
  0x10   : > { %s905_s20 = smov (!%p241_p9), 16   ;;  %s906_s21 = smov (!%p241_p9), 112  }
  0x11   : > { %s269_s9 = sand.u32 (!%p241_p9), 1, %s889_s25   ;;  %s786_s14 = sshll.u32 (!%p241_p9), %s969_s28, 7 }
  0x12   : > { %s770_s13 = sshll.u32 (!%p241_p9), %s269_s9, 3 }
  0x13   : > { %v899_v0 = vmov 0.0   ;;  %v900_v1 = vmov 0   ;;  %v313_v2 = vld [vmem:[%s1091_s2] sm:$0xff]  ;;  %s273_s15 = scalar_select %p272_p10, %s969_s28, 1  ;;  %vm332_vm0 = vcmask 1043456   ;;  %vm328_vm1 = vcmask 31744  }
  0x14   : > { %401 = vmatprep.mubr.f32.mxu0 %v899_v0  ;;  %834 = vset.pattern.permute.xlu0 %v900_v1  ;;  %v312_v5 = vld [vmem:[%s1090_s1] sm:$0xff]  ;;  %v277_v16 = vlaneseq  ;;  %vm466_vm12 = vcmask 195584   ;;  %v315_v42 = vld [vmem:[%s1092_s3 + $0x8] sm:$0xff]  ;;  %v316_v43 = vld [vmem:[%s1092_s3 + $0x10] sm:$0xff] }
  0x15   : > { %323 = vperm.xlu0 %834, %v313_v2   ;;  %540 = vmatprep.mubr.f32.mxu1 %v899_v0  ;;  %s785_s16 = sshll.u32 %s273_s15, 3  ;;  %v317_v15 = vld [vmem:[%s1093_s4] sm:$0xff]  ;;  %s271_s15 = scalar_lea.vmem [#allocation3], %s770_s13 }
  0x16   : > { %835 = vset.pattern.permute.xlu1 %v900_v1  ;;  %s276_s19 = scalar_lea.vmem %s1089_s0, %s785_s16  ;;  %v1021_v17 = vand.u32 127, %v277_v16  ;;  %v314_v41 = vld [vmem:[%s1092_s3] sm:$0xff]  ;;  %s707_s16 = sshll.u32 %s271_s15, 4  ;;  %s708_s16 = int_to_ptr.vmem [resolvable:$true] %s707_s16 }
  0x17   : > { %v1006_v3 = vld [vmem:[%s276_s19] sm:$0xff]  ;;  %s705_s19 = scalar_lea.hbm %s1096_s7, %s786_s14 }
  0x18   : > { %v1010_v4 = vcombine.high %v1006_v3, %v1006_v3  ;;  %v1024_v18 = vadd.s32 128, %v1021_v17  ;;  %v284_v22 = vand.u32 15, %v1021_v17  ;;  %vm445_vm4 = vcmp.lt.s32.totalorder %v1021_v17, 127  ;;  %v319_v50 = vld [vmem:[%s1095_s6] sm:$0xf] }
  0x19   : > { %vm438_vm5 = vcmp.lt.s32.totalorder %v1021_v17, 15  ;;  %vm418_vm8 = vcmp.lt.s32.totalorder %v1021_v17, 113  ;;  %vm425_vm9 = vcmp.lt.s32.totalorder %v1021_v17, 1  ;;  %vm563_vm13 = vcmp.lt.s32.totalorder %v1021_v17, 16 }
  0x1a   : > { %773 = vmatprep.subr.msk.mxu0 %vm332_vm0, %v1010_v4  ;;  %v291_v21 = vand.u32 15, %v1024_v18  ;;  %vm304_vm7 = vcmp.eq.s32.totalorder %v284_v22, 15  ;;  %vm306_vm11 = vcmp.eq.s32.totalorder %v284_v22, 0  ;;  %vm310_vm14 = vcmp.ge.s32.totalorder %v1021_v17, 16 }
  0x1b   : > { %774 = vmatpush1.msk.msra.mxu0 %vm332_vm0, %v1006_v3  ;;  %vm578_vm15 = vcmp.lt.s32.totalorder %v1021_v17, 112  ;;  %vm309_vm0 = vcmp.lt.s32.totalorder %v1024_v18, 240 }
  0x1c   : > { %775 = vmatmul.mubr.msk.f32.vlgmr.msra.gmra.mxu0 %vm328_vm1, %v312_v5  ;;  %vm305_vm6 = vcmp.eq.s32.totalorder %v291_v21, 15  ;;  %vm307_vm10 = vcmp.eq.s32.totalorder %v291_v21, 0 }
  0x1d   : > { %675 = vmatprep.mubr.f32.mxu0 %v899_v0 }
  0x90   : > { %v324_v6 = vpop.permute.xlu0 %323 }
  0xdc   : > { %v403_v7 = vpop.f32.mrf.mxu0 }
  0xdd   : > { %v404_v8 = vadd.f32 %v403_v7, %v324_v6 }
  0xde   : > { %v405_v9 = vpop.f32.mrf.mxu0 }
  0xdf   : > { %vm408_vm2 = vcmp.ge.f32.partialorder %v404_v8, 0.0  ;;  %v410_v10 = vmul.f32 0.01, %v404_v8  ;;  %v406_v11 = vadd.f32 %v405_v9, %v324_v6  ;;  %v318_v9 = vld [vmem:[%s1094_s5] sm:$0xf] }
  0xe1   : > { %v412_v12 = vsel %vm408_vm2, %v404_v8, %v410_v10  ;;  %v411_v13 = vmul.f32 0.01, %v406_v11  ;;  %vm409_vm3 = vcmp.ge.f32.partialorder %v406_v11, 0.0 }
  0xe2   : > { %441 = vrot.lane.b32.xlu1 %v412_v12, %s901_s22  ;;  %434 = vrot.lane.b32.xlu0 %v412_v12, %s902_s23 }
  0xe3   : > { %v413_v14 = vsel %vm409_vm3, %v406_v11, %v411_v13  ;;  %vm607_vm3 = vcmask 64512  }
  0xe6   : > { %414 = vrot.lane.b32.xlu1 %v412_v12, %s903_s29  ;;  %443 = vrot.lane.b32.xlu0 %v413_v14, %s901_s22  ;;  %s907_s22 = smov [#allocation3]  }
  0xea   : > { %436 = vrot.lane.b32.xlu1 %v413_v14, %s902_s23  ;;  %416 = vrot.lane.b32.xlu0 %v413_v14, %s903_s29  ;;  %s841_s23 = sshll.u32 %s907_s22, 4  ;;  %s842_s23 = int_to_ptr.vmem [resolvable:$false] %s841_s23 }
  0xeb   : > { %s843_s28 = scalar_lea.vmem %s842_s23, 256  ;;  %p844_p0 = scmp.lt.s32.totalorder %s708_s16, %s842_s23 }
  0xee   : > { %421 = vrot.lane.b32.xlu1 %v412_v12, %s904_s8  ;;  %423 = vrot.lane.b32.xlu0 %v413_v14, %s904_s8 }
  0xf2   : > { %591 = vperm.xlu1 %835, %v317_v15  }
 0x154   : > { %v442_v19 = vpop.permute.xlu1 %441  ;;  %v435_v20 = vpop.permute.xlu0 %434 }
 0x158   : > { %v415_v23 = vpop.permute.xlu1 %414  ;;  %v444_v24 = vpop.permute.xlu0 %443 }
 0x159   : > { %v446_v27 = vsel %vm445_vm4, %v442_v19, %v444_v24  ;;  %v447_v28 = vsel %vm445_vm4, %v444_v24, %v442_v19 }
 0x15c   : > { %v437_v25 = vpop.permute.xlu1 %436  ;;  %v417_v26 = vpop.permute.xlu0 %416 }
 0x15d   : > { %v439_v29 = vsel %vm438_vm5, %v435_v20, %v437_v25  ;;  %v440_v30 = vsel %vm438_vm5, %v437_v25, %v435_v20  ;;  %v419_v35 = vsel %vm418_vm8, %v415_v23, %v417_v26  ;;  %v420_v36 = vsel %vm418_vm8, %v417_v26, %v415_v23 }
 0x15e   : > { %v453_v31 = vsel %vm305_vm6, %v439_v29, %v447_v28  ;;  %v452_v32 = vsel %vm304_vm7, %v440_v30, %v446_v27 }
 0x15f   : > { %502 = vmatprep.subr.mxu1 %v453_v31 }
 0x160   : > { %v422_v33 = vpop.permute.xlu1 %421  ;;  %503 = vmatpush1.msra.mxu1 %v452_v32  ;;  %v424_v34 = vpop.permute.xlu0 %423 }
 0x161   : > { %v426_v37 = vsel %vm425_vm9, %v422_v33, %v424_v34  ;;  %v427_v38 = vsel %vm425_vm9, %v424_v34, %v422_v33  ;;  %504 = vmatprep.subr.mxu1 %v413_v14 }
 0x162   : > { %505 = vmatpush1.msra.mxu1 %v412_v12  ;;  %v433_v39 = vsel %vm307_vm10, %v420_v36, %v426_v37  ;;  %v432_v40 = vsel %vm306_vm11, %v419_v35, %v427_v38 }
 0x163   : > { %506 = vmatprep.subr.mxu1 %v433_v39 }
 0x164   : > { %507 = vmatpush1.msra.mxu1 %v432_v40 }
 0x165   : > { %776 = vmatmul.mubr.msk.f32.vlgmr.msra.gmra.mxu1 %vm466_vm12, %v314_v41 }
 0x166   : > { %546 = vmatprep.mubr.f32.mxu1 %v899_v0 }
 0x169   : > { %777 = vmatmul.mubr.msk.f32.gmra.mxu1 %vm466_vm12, %v315_v42 }
 0x16a   : > { %552 = vmatprep.mubr.f32.mxu1 %v899_v0 }
 0x16d   : > { %778 = vmatmul.mubr.msk.f32.gmra.mxu1 %vm466_vm12, %v316_v43  ;;  %v592_v51 = vpop.permute.xlu1 %591 }
 0x225   : > { %v542_v44 = vpop.f32.mrf.mxu1 }
 0x226   : > { %559 = vrot.lane.b32.xlu1 %v542_v44, %s905_s20 }
 0x227   : > { %v544_v45 = vpop.f32.mrf.mxu1 }
 0x228   : > { %561 = vrot.lane.b32.xlu0 %v544_v45, %s905_s20  ;;  %s693_s20 = scalar_lea.sflag [#allocation4], %s269_s9 }
 0x229   : > { %v548_v46 = vpop.f32.mrf.mxu1 }
 0x22b   : > { %v550_v47 = vpop.f32.mrf.mxu1 }
 0x22d   : > { %v554_v48 = vpop.f32.mrf.mxu1 }
 0x22e   : > { %574 = vrot.lane.b32.xlu0 %v554_v48, %s906_s21 }
 0x22f   : > { %v556_v49 = vpop.f32.mrf.mxu1 }
 0x230   : > { %576 = vrot.lane.b32.xlu1 %v556_v49, %s906_s21  ;;  %s837_s21 = scalar_lea.vmem %s708_s16, 128 }
 0x231   : > { %p838_p11 = scmp.ne.s32.totalorder %s708_s16, %s837_s21  ;;  %p845_p1 = scmp.lt.s32.totalorder %s843_s28, %s837_s21 }
 0x232   : > { %604 = vperm.xlu0 %834, %v319_v50  }
 0x233   : > { %p839_p12 = pnand %p838_p11, %p986_p5  ;;  %p846_p2 = por %p845_p1, %p844_p0 }
 0x235   : > { %p840_p13 = pneg %p839_p12 }
 0x237   : > { %p847_p3 = pnand %p846_p2, %p840_p13 }
 0x298   : > { %v560_v53 = vpop.permute.xlu1 %559 }
 0x29a   : > { %v562_v52 = vpop.permute.xlu0 %561 }
 0x29b   : > { %v565_v54 = vsel %vm563_vm13, %v562_v52, %v560_v53  ;;  %v564_v56 = vsel %vm563_vm13, %v560_v53, %v562_v52 }
 0x29c   : > { %v570_v55 = vsel %vm310_vm14, %v565_v54, 0.0  ;;  %v573_v60 = vadd.f32 %v564_v56, %v550_v47 }
 0x29d   : > { %v572_v57 = vadd.f32 %v570_v55, %v548_v46 }
 0x2a0   : > { %v575_v58 = vpop.permute.xlu0 %574 }
 0x2a2   : > { %v577_v59 = vpop.permute.xlu1 %576 }
 0x2a3   : > { %v579_v61 = vsel %vm578_vm15, %v575_v58, %v577_v59  ;;  %v580_v62 = vsel %vm578_vm15, %v577_v59, %v575_v58 }
 0x2a4   : > { %v586_v63 = vsel %vm309_vm0, %v580_v62, 0.0  ;;  %v587_v0 = vadd.f32 %v579_v61, %v572_v57 }
 0x2a5   : > { %v588_v1 = vadd.f32 %v586_v63, %v573_v60 }
 0x2a6   : > { %v594_v2 = vadd.f32 %v592_v51, %v587_v0 }
 0x2a7   : > { %v595_v5 = vadd.f32 %v592_v51, %v588_v1 }
 0x2a8   : > { %v598_v6 = vmul.f32 0.01, %v594_v2  ;;  %vm596_vm2 = vcmp.ge.f32.partialorder %v594_v2, 0.0 }
 0x2a9   : > { %vm597_vm1 = vcmp.ge.f32.partialorder %v595_v5, 0.0  ;;  %v599_v7 = vmul.f32 0.01, %v595_v5 }
 0x2aa   : > { %v600_v10 = vsel %vm596_vm2, %v594_v2, %v598_v6 }
 0x2ab   : > { %v601_v8 = vsel %vm597_vm1, %v595_v5, %v599_v7 }
 0x2ac   : > { %641 = vmatprep.subr.mxu0 %v601_v8 }
 0x2ad   : > { %642 = vmatpush1.msra.mxu0 %v600_v10  ;;  %v605_v11 = vpop.permute.xlu0 %604 }
 0x2ae   : > { %779 = vmatmul.mubr.msk.f32.vlgmr.msra.gmra.mxu0 %vm607_vm3, %v318_v9 }
 0x36e   : > { %v677_v12 = vpop.f32.mrf.mxu0 }
 0x36f   : > { %v678_v13 = vadd.f32 %v677_v12, %v605_v11 }
 0x370   : > { %v679_v14 = vpop.f32.mrf.mxu0 }
 0x371   : > { %v683_v15 = vadd.f32 %v678_v13, %v1006_v3  ;;  %v680_v16 = vadd.f32 %v679_v14, %v605_v11 }
 0x373   : > { %v684_v17 = vadd.f32 %v680_v16, %v1010_v4  ;;  %v685_v18 = vmax.f32 %v683_v15, 0.0 }
 0x375   : > { %v686_v19 = vmax.f32 %v684_v17, 0.0 }
 0x377   : > { %v689_v20 = vcombine.low %v685_v18, %v686_v19 }
 0x379   : > { %691 = vst [vmem:[%s271_s15] sm:$0xff] %v689_v20 }
 0x37a   : > { %850 = shalt.err (!%p847_p3)
}
 0x37b   : > { %s851_s29 = scalar_lea.hbm %s705_s19, 128  ;;  %s855_s13 = scalar_lea.hbm %s1096_s7, 256 }
 0x37c   : > { %p852_p4 = scmp.ne.s32.totalorder %s705_s19, %s851_s29  ;;  %p856_p9 = scmp.lt.s32.totalorder %s705_s19, %s1096_s7 }
 0x37d   : > { %p857_p10 = scmp.lt.s32.totalorder %s855_s13, %s851_s29 }
 0x37e   : > { %p853_p7 = pnand %p852_p4, %p986_p5 }
 0x37f   : > { %p858_p11 = por %p857_p10, %p856_p9 }
 0x380   : > { %p854_p8 = pneg %p853_p7 }
 0x382   : > { %p859_p12 = pnand %p858_p11, %p854_p8 }
 0x384   : > { %862 = shalt.err (!%p859_p12)
}
 0x385   : > { %787 = dma.vmem_to_hbm [thread:$0]  (%p986_p5), %s708_s16, 128, %s705_s19, %s693_s20  }
 0x386 PF: > { %p793_p13 = scmp.ge.s32.totalorder %s897_s27, 2  ;;  %s719_s17 = sand.u32 1, %s885_s24  }
 0x387   : > { %s720_s18 = scalar_lea.sflag [#allocation4], %s719_s17 }
 0x388   : > { %p790_p0 = pnand %p793_p13, %p990_p6 }
 0x38a   : > { %p791_p1 = pneg %p790_p0 }
 0x38c   : > { %880 = dma.done.wait (%p791_p1), %s720_s18, 128  }
 0x38d   : > { %882 = vsyncadd (%p791_p1), %s720_s18, 4294967168  ;;  %p17_p2 = scmp.ge.s32.totalorder %s973_s30, 4   ;;  %s1099_s24 = smov %s889_s25 }
 0x38e   : > { %s1100_s25 = smov %s893_s26  ;;  %s1101_s26 = smov %s984_s10 }
 0x38f   : > { %s1102_s27 = smov %s973_s30  ;;  %19 = sbr.rel (!%p17_p2) target bundleno = 3 (0x3), region = 83 }
 0x394   :  { %725 = vsyncpa [#allocation4], 1 }
 0x395   :  { %727 = vsyncpa [#allocation4 + $0x1], 1 }

</bundles_post_ra>
